<compile_context>
chip_gen: v6e
topology: v6e:2x2x1
jax: 0.10.0
libtpu: 0.0.40
codegen_flags: <defaults>
</compile_context>

<pallas_src>
import jax
import jax.numpy as jnp
from jax import lax
from jax.experimental import pallas as pl
from jax.experimental.pallas import tpu as pltpu


# ----------------------------- Pallas kernel ------------------------------ #
def _custom_clip_kernel(scalars_ref,               # SMEM (3,) f32: [logit_scale, img_ratio, txt_ratio]
                        img_flat_ref,              # VMEM (B, K)  bf16  flattened image
                        w_enc_ref,                 # VMEM (K, D)  bf16  stub image-encoder projection
                        txt_ref,                   # VMEM (B, D)  bf16  text features (gathered prompts)
                        wi1_ref, wi2_ref,          # VMEM (D, H), (H, D) bf16  image Adapter (bias=False)
                        wt1_ref, wt2_ref,          # VMEM (D, H), (H, D) bf16  text Adapter  (bias=False)
                        logits_ref,                # VMEM (B, B)  f32
                        img_out_ref,               # VMEM (B, D)  f32
                        txt_out_ref):              # VMEM (B, D)  f32
    f32 = jnp.float32
    bf16 = jnp.bfloat16

    def mm(a, b):
        # (m,k) @ (k,n): bf16 MXU operands, f32 accumulation.
        return lax.dot_general(a.astype(bf16), b.astype(bf16),
                               dimension_numbers=(((1,), (0,)), ((), ())),
                               preferred_element_type=f32)

    def l2norm(x):
        # matches torch: x / x.norm(dim=-1, keepdim=True)
        return x / jnp.sqrt(jnp.sum(x * x, axis=-1, keepdims=True))

    def adapter(x, w1_ref, w2_ref):
        # Linear -> ReLU -> Linear -> ReLU, no bias.
        h = jnp.maximum(mm(x, w1_ref[...]), 0.0)
        return jnp.maximum(mm(h, w2_ref[...]), 0.0)

    # Stub image encoder fused into the kernel (the only large-K matmul).
    img = l2norm(mm(img_flat_ref[...], w_enc_ref[...]))
    txt = l2norm(txt_ref[...].astype(f32))

    img_ratio = scalars_ref[1]
    txt_ratio = scalars_ref[2]

    img = img_ratio * adapter(img, wi1_ref, wi2_ref) + (1.0 - img_ratio) * img
    txt = txt_ratio * adapter(txt, wt1_ref, wt2_ref) + (1.0 - txt_ratio) * txt

    img = l2norm(img)
    txt = l2norm(txt)

    # img @ txt.T without materializing the transpose: contract last dims.
    logits = lax.dot_general(img.astype(bf16), txt.astype(bf16),
                             dimension_numbers=(((1,), (1,)), ((), ())),
                             preferred_element_type=f32)
    scale = jnp.exp(scalars_ref[0])            # applied to (B,B) since B < D
    logits_ref[...] = (scale * logits).astype(logits_ref.dtype)
    img_out_ref[...] = img.astype(img_out_ref.dtype)
    txt_out_ref[...] = txt.astype(txt_out_ref.dtype)


def custom_clip_pallas(logit_scale, image_ratio, text_ratio,
                       img_flat, w_enc, txt_feat, wi1, wi2, wt1, wt2):
    B, _ = img_flat.shape
    D = w_enc.shape[1]
    bf16 = jnp.bfloat16

    # Pack runtime scalars into one SMEM vector (no recompile per ratio value).
    scalars = jnp.concatenate([
        jnp.asarray(logit_scale, jnp.float32).reshape(-1)[:1],
        jnp.asarray([image_ratio, text_ratio], jnp.float32),
    ])

    vmem = pl.BlockSpec(memory_space=pltpu.MemorySpace.VMEM)
    smem = pl.BlockSpec(memory_space=pltpu.MemorySpace.SMEM)

    return pl.pallas_call(
        _custom_clip_kernel,
        out_shape=(
            jax.ShapeDtypeStruct((B, B), jnp.float32),   # logits
            jax.ShapeDtypeStruct((B, D), jnp.float32),   # image_features
            jax.ShapeDtypeStruct((B, D), jnp.float32),   # text_features
        ),
        in_specs=[smem] + [vmem] * 7,
        out_specs=(vmem, vmem, vmem),
    )(scalars,
      img_flat.astype(bf16), w_enc.astype(bf16), txt_feat.astype(bf16),
      wi1.astype(bf16), wi2.astype(bf16), wt1.astype(bf16), wt2.astype(bf16))


# -------------------------- plain-JAX glue / stubs ------------------------- #
# TODO(synk): clip_model.encode_image / encode_text are full CLIP transformer
# encoders (no checkpoint here); replaced by a deterministic linear projection
# (fused into the kernel) and an embedding-table gather respectively.
def stub_encode_text(label, class_embed_table):
    return class_embed_table[label]                      # (B, D)


def custom_clip_forward(image, label, params, *, image_ratio, text_ratio):
    B = image.shape[0]
    img_flat = image.reshape(B, -1)                      # free reshape (view)
    txt_feat = stub_encode_text(label, params["class_embed"])
    return custom_clip_pallas(
        params["logit_scale"], image_ratio, text_ratio,
        img_flat, params["w_img_enc"], txt_feat,
        params["wi1"], params["wi2"], params["wt1"], params["wt2"])


# --------------------------- reference (pure JAX) --------------------------- #
# Mirrors the kernel's numerics: bf16 matmul operands, f32 accumulation,
# f32 element-wise math (the torch module itself runs at clip_model.dtype=half).
def reference_forward(image, label, params, *, image_ratio, text_ratio):
    f32, bf16 = jnp.float32, jnp.bfloat16

    def mm(a, b):
        return jnp.dot(a.astype(bf16), b.astype(bf16), preferred_element_type=f32)

    def l2norm(x):
        return x / jnp.linalg.norm(x, axis=-1, keepdims=True)

    def adapter(x, w1, w2):
        return jnp.maximum(mm(jnp.maximum(mm(x, w1), 0.0), w2), 0.0)

    B = image.shape[0]
    img = l2norm(mm(image.reshape(B, -1), params["w_img_enc"]))
    txt = l2norm(params["class_embed"][label].astype(bf16).astype(f32))
    img = image_ratio * adapter(img, params["wi1"], params["wi2"]) + (1 - image_ratio) * img
    txt = text_ratio * adapter(txt, params["wt1"], params["wt2"]) + (1 - text_ratio) * txt
    img, txt = l2norm(img), l2norm(txt)
    scale = jnp.exp(params["logit_scale"][0])
    return scale * mm(img, txt.T), img, txt


# ----------------------------------- main ---------------------------------- #
if __name__ == "__main__":
    key = jax.random.PRNGKey(0)
    B, C, H, W = 2, 4, 16, 16        # image batch, NCHW
    D = 32                           # CLIP embed dim (ln_final.weight.shape[0])
    REDUCTION = 4                    # cfg.TRAINER.IMAGE_ADAPTER.REDUCTION
    RATIO = 0.2                      # cfg.TRAINER.IMAGE_ADAPTER.RATIO
    NUM_CLASSES = 8
    Hd = D // REDUCTION

    keys = jax.random.split(key, 8)
    image = jax.random.normal(keys[0], (B, C, H, W), jnp.float32)
    label = jax.random.randint(keys[1], (B,), 0, NUM_CLASSES)

    params = {
        # stub encoder weights (glue)
        "w_img_enc":   jax.random.normal(keys[2], (C * H * W, D), jnp.float32) * 0.05,
        "class_embed": jax.random.normal(keys[3], (NUM_CLASSES, D), jnp.float32),
        # image / text Adapter weights (Linear bias=False)
        "wi1": jax.random.normal(keys[4], (D, Hd), jnp.float32) * 0.2,
        "wi2": jax.random.normal(keys[5], (Hd, D), jnp.float32) * 0.2,
        "wt1": jax.random.normal(keys[6], (D, Hd), jnp.float32) * 0.2,
        "wt2": jax.random.normal(keys[7], (Hd, D), jnp.float32) * 0.2,
        # CLIP logit_scale parameter (log of temperature), scalar in SMEM
        "logit_scale": jnp.array([jnp.log(1.0 / 0.07)], jnp.float32),
    }

    logits, img_f, txt_f = custom_clip_forward(
        image, label, params, image_ratio=RATIO, text_ratio=RATIO)
    jax.block_until_ready((logits, img_f, txt_f))

    ref_logits, ref_img, ref_txt = reference_forward(
        image, label, params, image_ratio=RATIO, text_ratio=RATIO)

    assert logits.shape == (B, B) and img_f.shape == (B, D) and txt_f.shape == (B, D)
    assert jnp.allclose(logits, ref_logits, atol=2e-2, rtol=2e-3), \
        f"logits mismatch: {jnp.max(jnp.abs(logits - ref_logits))}"
    assert jnp.allclose(img_f, ref_img, atol=2e-4, rtol=1e-3), \
        f"image feature mismatch: {jnp.max(jnp.abs(img_f - ref_img))}"
    assert jnp.allclose(txt_f, ref_txt, atol=2e-4, rtol=1e-3), \
        f"text feature mismatch: {jnp.max(jnp.abs(txt_f - ref_txt))}"

    print("KERNEL_OK")
</pallas_src>

<mosaic_0001>
module attributes {stable_mosaic.version = 11 : i64} {
  func.func @_custom_clip_kernel(%arg0: memref<3xf32, #tpu.memory_space<smem>>, %arg1: memref<2x1024xbf16, #tpu.memory_space<vmem>>, %arg2: memref<1024x32xbf16, #tpu.memory_space<vmem>>, %arg3: memref<2x32xbf16, #tpu.memory_space<vmem>>, %arg4: memref<32x8xbf16, #tpu.memory_space<vmem>>, %arg5: memref<8x32xbf16, #tpu.memory_space<vmem>>, %arg6: memref<32x8xbf16, #tpu.memory_space<vmem>>, %arg7: memref<8x32xbf16, #tpu.memory_space<vmem>>, %arg8: memref<2x2xf32, #tpu.memory_space<vmem>>, %arg9: memref<2x32xf32, #tpu.memory_space<vmem>>, %arg10: memref<2x32xf32, #tpu.memory_space<vmem>>) attributes {dimension_semantics = [], scalar_prefetch = 0 : i64, scratch_operands = 0 : i64, tpu.core_type = #tpu.core_type<tc>} {
    %c0 = arith.constant 0 : index
    %c0_0 = arith.constant 0 : index
    %0 = vector.load %arg1[%c0, %c0_0] : memref<2x1024xbf16, #tpu.memory_space<vmem>>, vector<2x1024xbf16>
    %c0_1 = arith.constant 0 : index
    %c0_2 = arith.constant 0 : index
    %1 = vector.load %arg2[%c0_1, %c0_2] : memref<1024x32xbf16, #tpu.memory_space<vmem>>, vector<1024x32xbf16>
    %cst = arith.constant dense<0.000000e+00> : vector<2x32xf32>
    %2 = tpu.matmul %0, %1, %cst {dimension_numbers = #tpu.dot_dimension_numbers<[1], [0], [0], [1], [0, 0, 1, 1], [], []>} : vector<2x1024xbf16>, vector<1024x32xbf16>, vector<2x32xf32> -> vector<2x32xf32>
    %3 = arith.mulf %2, %2 : vector<2x32xf32>
    %cst_3 = arith.constant dense<0.000000e+00> : vector<2xf32>
    %4 = vector.multi_reduction <add>, %3, %cst_3 [1] : vector<2x32xf32> to vector<2xf32>
    %5 = vector.shape_cast %4 : vector<2xf32> to vector<2x1xf32>
    %6 = math.sqrt %5 : vector<2x1xf32>
    %7 = vector.broadcast %6 : vector<2x1xf32> to vector<2x32xf32>
    %8 = arith.divf %2, %7 : vector<2x32xf32>
    %c0_4 = arith.constant 0 : index
    %c0_5 = arith.constant 0 : index
    %9 = vector.load %arg3[%c0_4, %c0_5] : memref<2x32xbf16, #tpu.memory_space<vmem>>, vector<2x32xbf16>
    %10 = arith.extf %9 : vector<2x32xbf16> to vector<2x32xf32>
    %11 = arith.mulf %10, %10 : vector<2x32xf32>
    %cst_6 = arith.constant dense<0.000000e+00> : vector<2xf32>
    %12 = vector.multi_reduction <add>, %11, %cst_6 [1] : vector<2x32xf32> to vector<2xf32>
    %13 = vector.shape_cast %12 : vector<2xf32> to vector<2x1xf32>
    %14 = math.sqrt %13 : vector<2x1xf32>
    %15 = vector.broadcast %14 : vector<2x1xf32> to vector<2x32xf32>
    %16 = arith.divf %10, %15 : vector<2x32xf32>
    %c1 = arith.constant 1 : index
    %17 = memref.load %arg0[%c1] : memref<3xf32, #tpu.memory_space<smem>>
    %c2 = arith.constant 2 : index
    %18 = memref.load %arg0[%c2] : memref<3xf32, #tpu.memory_space<smem>>
    %c0_7 = arith.constant 0 : index
    %c0_8 = arith.constant 0 : index
    %19 = vector.load %arg4[%c0_7, %c0_8] : memref<32x8xbf16, #tpu.memory_space<vmem>>, vector<32x8xbf16>
    %20 = arith.truncf %8 : vector<2x32xf32> to vector<2x32xbf16>
    %cst_9 = arith.constant dense<0.000000e+00> : vector<2x8xf32>
    %21 = tpu.matmul %20, %19, %cst_9 {dimension_numbers = #tpu.dot_dimension_numbers<[1], [0], [0], [1], [0, 0, 1, 1], [], []>} : vector<2x32xbf16>, vector<32x8xbf16>, vector<2x8xf32> -> vector<2x8xf32>
    %cst_10 = arith.constant 0.000000e+00 : f32
    %22 = vector.broadcast %cst_10 : f32 to vector<2x8xf32>
    %23 = arith.maximumf %21, %22 : vector<2x8xf32>
    %c0_11 = arith.constant 0 : index
    %c0_12 = arith.constant 0 : index
    %24 = vector.load %arg5[%c0_11, %c0_12] : memref<8x32xbf16, #tpu.memory_space<vmem>>, vector<8x32xbf16>
    %25 = arith.truncf %23 : vector<2x8xf32> to vector<2x8xbf16>
    %cst_13 = arith.constant dense<0.000000e+00> : vector<2x32xf32>
    %26 = tpu.matmul %25, %24, %cst_13 {dimension_numbers = #tpu.dot_dimension_numbers<[1], [0], [0], [1], [0, 0, 1, 1], [], []>} : vector<2x8xbf16>, vector<8x32xbf16>, vector<2x32xf32> -> vector<2x32xf32>
    %cst_14 = arith.constant 0.000000e+00 : f32
    %27 = vector.broadcast %cst_14 : f32 to vector<2x32xf32>
    %28 = arith.maximumf %26, %27 : vector<2x32xf32>
    %29 = vector.broadcast %17 : f32 to vector<2x32xf32>
    %30 = arith.mulf %29, %28 : vector<2x32xf32>
    %cst_15 = arith.constant 1.000000e+00 : f32
    %31 = arith.subf %cst_15, %17 : f32
    %32 = vector.broadcast %31 : f32 to vector<2x32xf32>
    %33 = arith.mulf %32, %8 : vector<2x32xf32>
    %34 = arith.addf %30, %33 : vector<2x32xf32>
    %c0_16 = arith.constant 0 : index
    %c0_17 = arith.constant 0 : index
    %35 = vector.load %arg6[%c0_16, %c0_17] : memref<32x8xbf16, #tpu.memory_space<vmem>>, vector<32x8xbf16>
    %36 = arith.truncf %16 : vector<2x32xf32> to vector<2x32xbf16>
    %cst_18 = arith.constant dense<0.000000e+00> : vector<2x8xf32>
    %37 = tpu.matmul %36, %35, %cst_18 {dimension_numbers = #tpu.dot_dimension_numbers<[1], [0], [0], [1], [0, 0, 1, 1], [], []>} : vector<2x32xbf16>, vector<32x8xbf16>, vector<2x8xf32> -> vector<2x8xf32>
    %cst_19 = arith.constant 0.000000e+00 : f32
    %38 = vector.broadcast %cst_19 : f32 to vector<2x8xf32>
    %39 = arith.maximumf %37, %38 : vector<2x8xf32>
    %c0_20 = arith.constant 0 : index
    %c0_21 = arith.constant 0 : index
    %40 = vector.load %arg7[%c0_20, %c0_21] : memref<8x32xbf16, #tpu.memory_space<vmem>>, vector<8x32xbf16>
    %41 = arith.truncf %39 : vector<2x8xf32> to vector<2x8xbf16>
    %cst_22 = arith.constant dense<0.000000e+00> : vector<2x32xf32>
    %42 = tpu.matmul %41, %40, %cst_22 {dimension_numbers = #tpu.dot_dimension_numbers<[1], [0], [0], [1], [0, 0, 1, 1], [], []>} : vector<2x8xbf16>, vector<8x32xbf16>, vector<2x32xf32> -> vector<2x32xf32>
    %cst_23 = arith.constant 0.000000e+00 : f32
    %43 = vector.broadcast %cst_23 : f32 to vector<2x32xf32>
    %44 = arith.maximumf %42, %43 : vector<2x32xf32>
    %45 = vector.broadcast %18 : f32 to vector<2x32xf32>
    %46 = arith.mulf %45, %44 : vector<2x32xf32>
    %cst_24 = arith.constant 1.000000e+00 : f32
    %47 = arith.subf %cst_24, %18 : f32
    %48 = vector.broadcast %47 : f32 to vector<2x32xf32>
    %49 = arith.mulf %48, %16 : vector<2x32xf32>
    %50 = arith.addf %46, %49 : vector<2x32xf32>
    %51 = arith.mulf %34, %34 : vector<2x32xf32>
    %cst_25 = arith.constant dense<0.000000e+00> : vector<2xf32>
    %52 = vector.multi_reduction <add>, %51, %cst_25 [1] : vector<2x32xf32> to vector<2xf32>
    %53 = vector.shape_cast %52 : vector<2xf32> to vector<2x1xf32>
    %54 = math.sqrt %53 : vector<2x1xf32>
    %55 = vector.broadcast %54 : vector<2x1xf32> to vector<2x32xf32>
    %56 = arith.divf %34, %55 : vector<2x32xf32>
    %57 = arith.mulf %50, %50 : vector<2x32xf32>
    %cst_26 = arith.constant dense<0.000000e+00> : vector<2xf32>
    %58 = vector.multi_reduction <add>, %57, %cst_26 [1] : vector<2x32xf32> to vector<2xf32>
    %59 = vector.shape_cast %58 : vector<2xf32> to vector<2x1xf32>
    %60 = math.sqrt %59 : vector<2x1xf32>
    %61 = vector.broadcast %60 : vector<2x1xf32> to vector<2x32xf32>
    %62 = arith.divf %50, %61 : vector<2x32xf32>
    %63 = arith.truncf %56 : vector<2x32xf32> to vector<2x32xbf16>
    %64 = arith.truncf %62 : vector<2x32xf32> to vector<2x32xbf16>
    %cst_27 = arith.constant dense<0.000000e+00> : vector<2x2xf32>
    %65 = tpu.matmul %63, %64, %cst_27 {dimension_numbers = #tpu.dot_dimension_numbers<[1], [1], [0], [0], [0, 0, 1, 0], [], []>} : vector<2x32xbf16>, vector<2x32xbf16>, vector<2x2xf32> -> vector<2x2xf32>
    %c0_28 = arith.constant 0 : index
    %66 = memref.load %arg0[%c0_28] : memref<3xf32, #tpu.memory_space<smem>>
    %67 = math.exp %66 : f32
    %68 = vector.broadcast %67 : f32 to vector<2x2xf32>
    %69 = arith.mulf %68, %65 : vector<2x2xf32>
    %c0_29 = arith.constant 0 : index
    %c0_30 = arith.constant 0 : index
    %70 = vector.load %arg8[%c0_29, %c0_30] : memref<2x2xf32, #tpu.memory_space<vmem>>, vector<2x2xf32>
    tpu.vector_store %arg8[%c0_29, %c0_30], %69 {strides = array<i32>} : memref<2x2xf32, #tpu.memory_space<vmem>>, vector<2x2xf32>,
    %c0_31 = arith.constant 0 : index
    %c0_32 = arith.constant 0 : index
    %71 = vector.load %arg9[%c0_31, %c0_32] : memref<2x32xf32, #tpu.memory_space<vmem>>, vector<2x32xf32>
    tpu.vector_store %arg9[%c0_31, %c0_32], %56 {strides = array<i32>} : memref<2x32xf32, #tpu.memory_space<vmem>>, vector<2x32xf32>,
    %c0_33 = arith.constant 0 : index
    %c0_34 = arith.constant 0 : index
    %72 = vector.load %arg10[%c0_33, %c0_34] : memref<2x32xf32, #tpu.memory_space<vmem>>, vector<2x32xf32>
    tpu.vector_store %arg10[%c0_33, %c0_34], %62 {strides = array<i32>} : memref<2x32xf32, #tpu.memory_space<vmem>>, vector<2x32xf32>,
    return
  }
}

</mosaic_0001>

<bundles_post_ra>
// kernel: tpu_custom_call.1
= control target key start
LH: loop header
LB: loop body
LE: loop exit
PB: predicated region body
PF: predicated region fallthrough
CT: control target
= control target key end

     0   :  { %16 = vsyncpa [#allocation4], 0  ;;  %s1887_s0 = inlined_call_operand.vmem [shape: f32[3], index: 0, kind: input, shape index: {}]   ;;  %s1888_s1 = inlined_call_operand.vmem [shape: bf16[2,1024], index: 1, kind: input, shape index: {}]   ;;  %s1889_s2 = inlined_call_operand.vmem [shape: bf16[1024,32], index: 2, kind: input, shape index: {}]   ;;  %s1890_s3 = inlined_call_operand.vmem [shape: bf16[2,32], index: 3, kind: input, shape index: {}]   ;;  %s1891_s4 = inlined_call_operand.vmem [shape: bf16[32,8], index: 4, kind: input, shape index: {}]   ;;  %s1892_s5 = inlined_call_operand.vmem [shape: bf16[8,32], index: 5, kind: input, shape index: {}]   ;;  %s1893_s6 = inlined_call_operand.vmem [shape: bf16[32,8], index: 6, kind: input, shape index: {}]   ;;  %s1894_s7 = inlined_call_operand.vmem [shape: bf16[8,32], index: 7, kind: input, shape index: {}]   ;;  %s1895_s8 = inlined_call_operand.hbm [shape: f32[2,2], index: 8, kind: output, shape index: {0}]   ;;  %s1896_s9 = inlined_call_operand.hbm [shape: f32[2,32], index: 9, kind: output, shape index: {1}]   ;;  %s1897_s10 = inlined_call_operand.hbm [shape: f32[2,32], index: 10, kind: output, shape index: {2}]  }
   0x1   :  { %17 = vsyncpa [#allocation3], 0 }
   0x2   :  { %18 = vsyncpa [#allocation7], 0  ;;  %s25_s15 = sshll.u32 %s1887_s0, 4  ;;  %s26_s15 = int_to_ptr.vmem [resolvable:$true] %s25_s15 }
   0x3   :  { %s1477_s16 = scalar_lea.vmem %s26_s15, 16  ;;  %p1482_p1 = scmp.lt.s32.totalorder %s26_s15, %s26_s15 }
   0x4   :  { %p1478_p0 = scmp.ne.s32.totalorder %s26_s15, %s1477_s16  ;;  %p1483_p2 = scmp.lt.s32.totalorder %s1477_s16, %s1477_s16 }
   0x6   :  { %p1484_p3 = por %p1483_p2, %p1482_p1 }
   0x8   :  { %p1485_p4 = pnand %p1484_p3, %p1478_p0 }
   0xa   :  { %1488 = shalt.err (!%p1485_p4)
}
   0xb   :  { %s1555_s17 = smov [#allocation2]  }
   0xc   :  { %28 = dma.vmem_to_smem %s26_s15, 16, %s1555_s17, [#allocation4]  }
   0xd   :  { %1549 = dma.done.wait [#allocation4], 16  }
   0xe   :  { %1550 = vsyncadd [#allocation4], 4294967280 }
   0xf   :  { %46 = sfence }
  0x10   :  { %v1390_v0 = vld [vmem:[%s1889_s2 + $0x78] sm:$0xff]   ;;  %v1394_v4 = vld [vmem:[%s1889_s2 + $0x70] sm:$0xff]   ;;  %v1398_v8 = vld [vmem:[%s1889_s2 + $0x68] sm:$0xff]   ;;  %v182_v28 = vlaneseq  ;;  %v1556_v36 = vmov 1966171168   ;;  %vm780_vm0 = vcmask 254976  }
  0x11   :  { %v1391_v1 = vld [vmem:[%s1889_s2 + $0xf8] sm:$0xff]   ;;  %1247 = vmatprep.subr.bf16.mxu0 %v1390_v0  ;;  %v1395_v5 = vld [vmem:[%s1889_s2 + $0xf0] sm:$0xff]   ;;  %v1399_v9 = vld [vmem:[%s1889_s2 + $0xe8] sm:$0xff]   ;;  %v180_v37 = vunpack.c.l.s4 %v1556_v36  ;;  %vm1558_vm1 = vmmov 0   ;;  %vm878_vm2 = vcmask 1043456   ;;  %vm827_vm7 = vcmask 261120  }
  0x12   :  { %v1392_v2 = vld [vmem:[%s1889_s2 + $0x38] sm:$0xff]   ;;  %1269 = vmatprep.subr.bf16.mxu1 %v1391_v1  ;;  %v1396_v6 = vld [vmem:[%s1889_s2 + $0x30] sm:$0xff]   ;;  %v1400_v10 = vld [vmem:[%s1889_s2 + $0x28] sm:$0xff]   ;;  %v183_v33 = vshrl.u32 %v182_v28, 7  ;;  %vm874_vm8 = vcmask 64512   ;;  %s1119_s29 = sld [smem:[#allocation2]] }
  0x13   :  { %v1393_v3 = vld [vmem:[%s1889_s2 + $0xb8] sm:$0xff]   ;;  %1248 = vmatpush3.bf16.msra.mxu0 %v1392_v2  ;;  %v1397_v7 = vld [vmem:[%s1889_s2 + $0xb0] sm:$0xff]   ;;  %v1401_v11 = vld [vmem:[%s1889_s2 + $0xa8] sm:$0xff]   ;;  %v181_v40 = vunpack.c.0.s8 %v180_v37  ;;  %s1559_s30 = smov [#allocation6]  }
  0x14   :  { %1270 = vmatpush3.bf16.msra.mxu1 %v1393_v3  ;;  %1249 = vmatprep.subr.bf16.mxu0 %v1394_v4  ;;  %v1402_v12 = vld [vmem:[%s1889_s2 + $0x60] sm:$0xff]   ;;  %v1406_v16 = vld [vmem:[%s1889_s2 + $0x58] sm:$0xff]   ;;  %v1410_v20 = vld [vmem:[%s1889_s2 + $0x50] sm:$0xff]   ;;  %s1146_s11 = sshll.u32 %s1559_s30, 4  ;;  %s1147_s11 = int_to_ptr.vmem [resolvable:$true] %s1146_s11 }
  0x15   :  { %1271 = vmatprep.subr.bf16.mxu1 %v1395_v5  ;;  %v1403_v13 = vld [vmem:[%s1889_s2 + $0xe0] sm:$0xff]   ;;  %v1407_v17 = vld [vmem:[%s1889_s2 + $0xd8] sm:$0xff]   ;;  %v1411_v21 = vld [vmem:[%s1889_s2 + $0xd0] sm:$0xff]   ;;  %v1725_v41 = vsub.s32 %v181_v40, %v183_v33  ;;  %s1489_s12 = scalar_lea.vmem %s1147_s11, 32  ;;  %p1494_p6 = scmp.lt.s32.totalorder %s1147_s11, %s1147_s11 }
  0x16   :  { %v1404_v14 = vld [vmem:[%s1889_s2 + $0x20] sm:$0xff]   ;;  %v1408_v18 = vld [vmem:[%s1889_s2 + $0x18] sm:$0xff]   ;;  %v1412_v22 = vld [vmem:[%s1889_s2 + $0x10] sm:$0xff]   ;;  %p1490_p5 = scmp.ne.s32.totalorder %s1147_s11, %s1489_s12  ;;  %p1495_p7 = scmp.lt.s32.totalorder %s1489_s12, %s1489_s12 }
  0x17   :  { %1250 = vmatpush3.bf16.msra.mxu0 %v1396_v6  ;;  %v1405_v15 = vld [vmem:[%s1889_s2 + $0xa0] sm:$0xff]   ;;  %v1409_v19 = vld [vmem:[%s1889_s2 + $0x98] sm:$0xff]   ;;  %v1413_v23 = vld [vmem:[%s1889_s2 + $0x90] sm:$0xff]  }
  0x18   :  { %1272 = vmatpush3.bf16.msra.mxu1 %v1397_v7  ;;  %1251 = vmatprep.subr.bf16.mxu0 %v1398_v8  ;;  %v1414_v24 = vld [vmem:[%s1889_s2 + $0x48] sm:$0xff]   ;;  %v1418_v29 = vld [vmem:[%s1889_s2 + $0x40] sm:$0xff]   ;;  %v1423_v35 = vld [vmem:[%s1889_s2 + $0x178] sm:$0xff]   ;;  %p1496_p8 = por %p1495_p7, %p1494_p6 }
  0x19   :  { %1273 = vmatprep.subr.bf16.mxu1 %v1399_v9  ;;  %v1415_v25 = vld [vmem:[%s1889_s2 + $0xc8] sm:$0xff]   ;;  %v1419_v30 = vld [vmem:[%s1889_s2 + $0xc0] sm:$0xff]   ;;  %v1424_v38 = vld [vmem:[%s1889_s2 + $0x1f8] sm:$0xff]  }
  0x1a   :  { %v1416_v26 = vld [vmem:[%s1889_s2 + $0x8] sm:$0xff]   ;;  %v1420_v31 = vld [vmem:[%s1889_s2] sm:$0xff]   ;;  %v1425_v47 = vld [vmem:[%s1889_s2 + $0x138] sm:$0xff]   ;;  %p1497_p9 = pnand %p1496_p8, %p1490_p5 }
  0x1b   :  { %1252 = vmatpush3.bf16.msra.mxu0 %v1400_v10  ;;  %v1417_v27 = vld [vmem:[%s1889_s2 + $0x88] sm:$0xff]   ;;  %v1421_v32 = vld [vmem:[%s1889_s2 + $0x80] sm:$0xff]   ;;  %v1426_v49 = vld [vmem:[%s1889_s2 + $0x1b8] sm:$0xff]  }
  0x1c   :  { %1274 = vmatpush3.bf16.msra.mxu1 %v1401_v11  ;;  %1253 = vmatprep.subr.bf16.mxu0 %v1402_v12  ;;  %v48_v34 = vld [vmem:[%s1888_s1] sm:$0xff]  ;;  %v1427_v52 = vld [vmem:[%s1889_s2 + $0x170] sm:$0xff]   ;;  %v1431_v58 = vld [vmem:[%s1889_s2 + $0x168] sm:$0xff]  }
  0x1d   :  { %1275 = vmatprep.subr.bf16.mxu1 %v1403_v13  ;;  %v178_v39 = vcombine.high %v48_v34, %v48_v34  ;;  %v185_v42 = vrot.slane %v48_v34, %v1725_v41  ;;  %v1428_v54 = vld [vmem:[%s1889_s2 + $0x1f0] sm:$0xff]   ;;  %v1432_v59 = vld [vmem:[%s1889_s2 + $0x1e8] sm:$0xff]   ;;  %v1435_v62 = vld [vmem:[%s1889_s2 + $0x160] sm:$0xff]  }
  0x1e   :  { %v1429_v55 = vld [vmem:[%s1889_s2 + $0x130] sm:$0xff]   ;;  %v1433_v60 = vld [vmem:[%s1889_s2 + $0x128] sm:$0xff]   ;;  %v1436_v63 = vld [vmem:[%s1889_s2 + $0x1e0] sm:$0xff]  }
  0x1f   :  { %1254 = vmatpush3.bf16.msra.mxu0 %v1404_v14  ;;  %v1729_v43 = vrot.slane %v178_v39, %v1725_v41  ;;  %v193_v44 = vcombine.high %v185_v42, %v185_v42  ;;  %v201_v45 = vrot.slane %v185_v42, %v1725_v41  ;;  %v1430_v57 = vld [vmem:[%s1889_s2 + $0x1b0] sm:$0xff]   ;;  %v1434_v61 = vld [vmem:[%s1889_s2 + $0x1a8] sm:$0xff]   ;;  %v1437_v0 = vld [vmem:[%s1889_s2 + $0x120] sm:$0xff]  }
  0x20   :  { %1276 = vmatpush3.bf16.msra.mxu1 %v1405_v15  ;;  %1255 = vmatprep.subr.bf16.mxu0 %v1406_v16  ;;  %v1438_v1 = vld [vmem:[%s1889_s2 + $0x1a0] sm:$0xff]   ;;  %v1439_v2 = vld [vmem:[%s1889_s2 + $0x158] sm:$0xff]   ;;  %v1443_v6 = vld [vmem:[%s1889_s2 + $0x150] sm:$0xff]  }
  0x21   :  { %1277 = vmatprep.subr.bf16.mxu1 %v1407_v17  ;;  %v194_v46 = vcombine.high %v1729_v43, %v1729_v43  ;;  %v215_v48 = vrot.slane %v193_v44, %v1725_v41  ;;  %v223_v51 = vcombine.high %v201_v45, %v201_v45  ;;  %v1440_v3 = vld [vmem:[%s1889_s2 + $0x1d8] sm:$0xff]   ;;  %v1444_v7 = vld [vmem:[%s1889_s2 + $0x1d0] sm:$0xff]   ;;  %v1447_v10 = vld [vmem:[%s1889_s2 + $0x148] sm:$0xff]   ;;  %v208_v17 = vrot.slane %v1729_v43, %v1725_v41 }
  0x22   :  { %v1441_v4 = vld [vmem:[%s1889_s2 + $0x118] sm:$0xff]   ;;  %v1445_v8 = vld [vmem:[%s1889_s2 + $0x110] sm:$0xff]   ;;  %v1448_v11 = vld [vmem:[%s1889_s2 + $0x1c8] sm:$0xff]  }
  0x23   :  { %1256 = vmatpush3.bf16.msra.mxu0 %v1408_v18  ;;  %v222_v50 = vrot.slane %v194_v46, %v1725_v41  ;;  %651 = vmatprep.mubr.bf16.mxu0 %v215_v48  ;;  %v225_v53 = vcombine.high %v215_v48, %v215_v48  ;;  %v1442_v5 = vld [vmem:[%s1889_s2 + $0x198] sm:$0xff]   ;;  %v1446_v9 = vld [vmem:[%s1889_s2 + $0x190] sm:$0xff]   ;;  %v1449_v12 = vld [vmem:[%s1889_s2 + $0x108] sm:$0xff]  }
  0x24   :  { %1278 = vmatpush3.bf16.msra.mxu1 %v1409_v19  ;;  %1257 = vmatprep.subr.bf16.mxu0 %v1410_v20  ;;  %v1451_v13 = vld [vmem:[%s1889_s2 + $0x140] sm:$0xff]   ;;  %v1450_v14 = vld [vmem:[%s1889_s2 + $0x188] sm:$0xff]   ;;  %v224_v19 = vcombine.high %v208_v17, %v208_v17 }
  0x25   :  { %1279 = vmatprep.subr.bf16.mxu1 %v1411_v21  ;;  %v226_v56 = vcombine.high %v222_v50, %v222_v50  ;;  %691 = vmatprep.mubr.bf16.mxu1 %v225_v53  ;;  %v1452_v15 = vld [vmem:[%s1889_s2 + $0x1c0] sm:$0xff]  }
  0x26   :  { %v1453_v16 = vld [vmem:[%s1889_s2 + $0x100] sm:$0xff]  }
  0x27   :  { %1258 = vmatpush3.bf16.msra.mxu0 %v1412_v22  ;;  %v1454_v18 = vld [vmem:[%s1889_s2 + $0x180] sm:$0xff]  }
  0x28   :  { %1280 = vmatpush3.bf16.msra.mxu1 %v1413_v23  ;;  %1259 = vmatprep.subr.bf16.mxu0 %v1414_v24  ;;  %v793_v33 = vld [vmem:[%s1890_s3] sm:$0x1] }
  0x29   :  { %1281 = vmatprep.subr.bf16.mxu1 %v1415_v25  ;;  %v794_v40 = vunpack.c.l.bf16 %v793_v33 }
  0x2b   :  { %1260 = vmatpush3.bf16.msra.mxu0 %v1416_v26  ;;  %v795_v46 = vmul.f32 %v794_v40, %v794_v40 }
  0x2c   :  { %1282 = vmatpush3.bf16.msra.mxu1 %v1417_v27  ;;  %1261 = vmatprep.subr.bf16.mxu0 %v1418_v29 }
  0x2d   :  { %1283 = vmatprep.subr.bf16.mxu1 %v1419_v30  ;;  %v796_v48 = vsel %vm780_vm0, %v795_v46, 0.0 }
  0x2f   :  { %1262 = vmatpush3.bf16.msra.mxu0 %v1420_v31 }
  0x30   :  { %1284 = vmatpush3.bf16.msra.mxu1 %v1421_v32  ;;  %1291 = vmatprep.subr.bf16.mxu0 %v1423_v35 }
  0x31   :  { %1313 = vmatprep.subr.bf16.mxu1 %v1424_v38 }
  0x32   :  { %652 = vmatmul.mubr.bf16.vlgmr.msra.gmra.mxu0 %v201_v45 }
  0x33   :  { %1292 = vmatpush3.bf16.msra.mxu0 %v1425_v47  ;;  %692 = vmatmul.mubr.bf16.vlgmr.msra.gmra.mxu1 %v223_v51  ;;  %v1456_v51 = vld [vmem:[%s1891_s4] sm:$0xff]  }
  0x34   :  { %1293 = vmatprep.subr.bf16.mxu0 %v1427_v52  ;;  %1314 = vmatpush3.bf16.msra.mxu1 %v1426_v49  ;;  %v1455_v49 = vld [vmem:[%s1891_s4 + $0x8] sm:$0xff]   ;;  %v872_v52 = vld [vmem:[%s1892_s5] sm:$0xf] }
  0x35   :  { %731 = vmatprep.mubr.bf16.mxu0 %v222_v50  ;;  %1315 = vmatprep.subr.bf16.mxu1 %v1428_v54  ;;  %v1557_v50 = vmov 0.0   ;;  %v880_v53 = vsel %vm878_vm2, %v872_v52, 0 }
  0x36   :  { %771 = vmatprep.mubr.bf16.mxu1 %v226_v56 }
  0x37   :  { %1294 = vmatpush3.bf16.msra.mxu0 %v1429_v55 }
  0x38   :  { %1295 = vmatprep.subr.bf16.mxu0 %v1431_v58  ;;  %1316 = vmatpush3.bf16.msra.mxu1 %v1430_v57 }
  0x39   :  { %1317 = vmatprep.subr.bf16.mxu1 %v1432_v59 }
  0x3b   :  { %1296 = vmatpush3.bf16.msra.mxu0 %v1433_v60 }
  0x3c   :  { %1297 = vmatprep.subr.bf16.mxu0 %v1435_v62  ;;  %1318 = vmatpush3.bf16.msra.mxu1 %v1434_v61 }
  0x3d   :  { %1319 = vmatprep.subr.bf16.mxu1 %v1436_v63 }
  0x3f   :  { %1298 = vmatpush3.bf16.msra.mxu0 %v1437_v0 }
  0x40   :  { %1299 = vmatprep.subr.bf16.mxu0 %v1439_v2  ;;  %1320 = vmatpush3.bf16.msra.mxu1 %v1438_v1 }
  0x41   :  { %1321 = vmatprep.subr.bf16.mxu1 %v1440_v3 }
  0x43   :  { %1300 = vmatpush3.bf16.msra.mxu0 %v1441_v4  ;;  %v1457_v4 = vld [vmem:[%s1893_s6 + $0x8] sm:$0xff]  }
  0x44   :  { %1301 = vmatprep.subr.bf16.mxu0 %v1443_v6  ;;  %1322 = vmatpush3.bf16.msra.mxu1 %v1442_v5 }
  0x45   :  { %1323 = vmatprep.subr.bf16.mxu1 %v1444_v7  ;;  %v1458_v7 = vld [vmem:[%s1893_s6] sm:$0xff]   ;;  %s1236_s6 = sld [smem:[#allocation2 + $0x1]] }
  0x47   :  { %1302 = vmatpush3.bf16.msra.mxu0 %v1445_v8 }
  0x48   :  { %1303 = vmatprep.subr.bf16.mxu0 %v1447_v10  ;;  %1324 = vmatpush3.bf16.msra.mxu1 %v1446_v9 }
  0x49   :  { %1325 = vmatprep.subr.bf16.mxu1 %v1448_v11  ;;  %v990_v11 = vld [vmem:[%s1894_s7] sm:$0xf]  ;;  %s1237_s7 = sld [smem:[#allocation2 + $0x2]] }
  0x4b   :  { %1304 = vmatpush3.bf16.msra.mxu0 %v1449_v12  ;;  %s925_s27 = ssub.f32 1.0, %s1236_s6 }
  0x4c   :  { %1305 = vmatprep.subr.bf16.mxu0 %v1451_v13  ;;  %1326 = vmatpush3.bf16.msra.mxu1 %v1450_v14 }
  0x4d   :  { %1327 = vmatprep.subr.bf16.mxu1 %v1452_v15  ;;  %v996_v15 = vsel %vm878_vm2, %v990_v11, 0  ;;  %v926_v33 = vstv %s925_s27 }
  0x4f   :  { %1306 = vmatpush3.bf16.msra.mxu0 %v1453_v16  ;;  %s1041_s28 = ssub.f32 1.0, %s1237_s7 }
  0x50   :  { %1328 = vmatpush3.bf16.msra.mxu1 %v1454_v18  ;;  %1347 = vmatprep.subr.bf16.mxu0 %v1557_v50 }
  0x51   :  { %1355 = vmatprep.subr.bf16.mxu1 %v1557_v50 }
  0x52   :  { %732 = vmatmul.mubr.bf16.vlgmr.msra.gmra.mxu0 %v208_v17 }
  0x53   :  { %772 = vmatmul.mubr.bf16.vlgmr.msra.gmra.mxu1 %v224_v19  ;;  %1351 = vmatprep.mubr.msk.bf16.mxu0 %vm1558_vm1, %v1557_v50 }
  0x54   :  { %1348 = vmatpush3.bf16.msra.mxu0 %v1455_v49  ;;  %1357 = vmatprep.mubr.msk.bf16.mxu1 %vm1558_vm1, %v1557_v50 }
  0x55   :  { %1349 = vmatprep.subr.bf16.mxu0 %v1557_v50  ;;  %1356 = vmatpush3.bf16.msra.mxu1 %v880_v53 }
  0x56   :  { %1369 = vmatprep.subr.bf16.mxu1 %v1557_v50 }
  0x58   :  { %1350 = vmatpush3.bf16.msra.mxu0 %v1456_v51 }
  0x59   :  { %1361 = vmatprep.subr.bf16.mxu0 %v1557_v50 }
  0xf2   :  { %v1263_v20 = vpop.f32.mrf.mxu0 }
  0xf3   :  { %v1285_v21 = vpop.f32.mrf.mxu1 }
  0xf4   :  { %v1264_v22 = vpop.f32.mrf.mxu0 }
  0xf5   :  { %v1286_v23 = vpop.f32.mrf.mxu1  ;;  %v1265_v28 = vadd.f32 %v1264_v22, %v1263_v20 }
  0xf6   :  { %v1266_v24 = vpop.f32.mrf.mxu0  ;;  %v1287_v29 = vadd.f32 %v1286_v23, %v1285_v21 }
  0xf7   :  { %v1288_v25 = vpop.f32.mrf.mxu1 }
  0xf8   :  { %v1267_v26 = vpop.f32.mrf.mxu0  ;;  %v694_v34 = vadd.f32 %v1287_v29, %v1265_v28  ;;  %v923_v28 = vstv %s1236_s6 }
  0xf9   :  { %v1289_v27 = vpop.f32.mrf.mxu1 }
 0x112   :  { %v1307_v30 = vpop.f32.mrf.mxu0 }
 0x113   :  { %v1329_v31 = vpop.f32.mrf.mxu1 }
 0x114   :  { %v1308_v32 = vpop.f32.mrf.mxu0 }
 0x115   :  { %v1309_v35 = vadd.f32 %v1308_v32, %v1307_v30  ;;  %v1330_v36 = vpop.f32.mrf.mxu1  ;;  %v1042_v32 = vstv %s1041_s28 }
 0x116   :  { %v1310_v37 = vpop.f32.mrf.mxu0  ;;  %v1331_v39 = vadd.f32 %v1330_v36, %v1329_v31  ;;  %v1039_v31 = vstv %s1237_s7 }
 0x117   :  { %v734_v38 = vadd.f32 %v1309_v35, %v694_v34  ;;  %v1332_v41 = vpop.f32.mrf.mxu1 }
 0x118   :  { %v1311_v42 = vpop.f32.mrf.mxu0 }
 0x119   :  { %v774_v43 = vadd.f32 %v1331_v39, %v734_v38  ;;  %v1333_v44 = vpop.f32.mrf.mxu1 }
 0x11b   :  { %v779_v45 = vmul.f32 %v774_v43, %v774_v43 }
 0x11d   :  { %v781_v47 = vsel %vm780_vm0, %v779_v45, 0.0 }
 0x11e   :  { %782 = vadd.xlane.f32.xlu0 %v781_v47 }
 0x122   :  { %797 = vadd.xlane.f32.xlu0 %v796_v48  ;;  %v1120_v48 = vstv %s1119_s29 }
 0x123   :  { %v1121_v49 = vmul.f32 1.442695, %v1120_v48 }
 0x1a7   :  { %v783_v54 = vpop.xlane.xlu0 %782 }
 0x1a8   :  { %1459 = vrsqrt.f32 %v783_v54  ;;  %vm786_vm3 = vcmp.eq.f32.partialorder %v783_v54, inf  ;;  %v789_v58 = vand.u32 2147483648, %v783_v54  ;;  %vm788_vm4 = vcmp.eq.f32.partialorder %v783_v54, 0.0 }
 0x1ab   :  { %v798_v55 = vpop.xlane.xlu0 %797 }
 0x1ac   :  { %1461 = vrsqrt.f32 %v798_v55  ;;  %vm801_vm5 = vcmp.eq.f32.partialorder %v798_v55, inf  ;;  %v804_v63 = vand.u32 2147483648, %v798_v55  ;;  %vm803_vm6 = vcmp.eq.f32.partialorder %v798_v55, 0.0 }
 0x1b5   :  { %v1460_v56 = vpop.eup %1459 }
 0x1b6   :  { %v785_v57 = vmul.f32 %v1460_v56, %v783_v54 }
 0x1b8   :  { %v787_v59 = vsel %vm786_vm3, %v783_v54, %v785_v57 }
 0x1b9   :  { %v1462_v60 = vpop.eup %1461  ;;  %v790_v61 = vsel %vm788_vm4, %v789_v58, %v787_v59 }
 0x1ba   :  { %1463 = vrcp.f32 %v790_v61  ;;  %v800_v62 = vmul.f32 %v1462_v60, %v798_v55 }
 0x1bc   :  { %v802_v0 = vsel %vm801_vm5, %v798_v55, %v800_v62 }
 0x1bd   :  { %v805_v1 = vsel %vm803_vm6, %v804_v63, %v802_v0 }
 0x1be   :  { %1465 = vrcp.f32 %v805_v1 }
 0x1bf   :  { %1467 = vpow2.f32 %v1121_v49 }
 0x1c7   :  { %v1464_v2 = vpop.eup %1463 }
 0x1c8   :  { %v792_v3 = vmul.f32 %v1464_v2, %v774_v43 }
 0x1ca   :  { %v814_v5 = vpack.c.bf16 %v792_v3, %v792_v3  ;;  %v927_v39 = vmul.f32 %v926_v33, %v792_v3 }
 0x1cb   :  { %v1466_v6 = vpop.eup %1465 }
 0x1cc   :  { %1352 = vmatmul.mubr.msk.bf16.vlgmr.msra.gmra.mxu0 %vm827_vm7, %v814_v5  ;;  %v807_v8 = vmul.f32 %v1466_v6, %v794_v40 }
 0x1cd   :  { %1362 = vmatpush3.bf16.msra.mxu0 %v1457_v4  ;;  %1365 = vmatprep.mubr.msk.bf16.mxu0 %vm1558_vm1, %v1557_v50 }
 0x1ce   :  { %1363 = vmatprep.subr.bf16.mxu0 %v1557_v50  ;;  %v933_v9 = vpack.c.bf16 %v807_v8, %v807_v8  ;;  %v1043_v38 = vmul.f32 %v1042_v32, %v807_v8 }
 0x1d1   :  { %1364 = vmatpush3.bf16.msra.mxu0 %v1458_v7 }
 0x1d2   :  { %1375 = vmatprep.subr.bf16.mxu0 %v1557_v50 }
 0x1d4   :  { %1366 = vmatmul.mubr.msk.bf16.vlgmr.msra.gmra.mxu0 %vm827_vm7, %v933_v9 }
 0x1d5   :  { %1377 = vmatprep.mubr.msk.bf16.mxu0 %vm1558_vm1, %v1557_v50 }
 0x28c   :  { %v865_v10 = vpop.f32.mrf.mxu0 }
 0x28d   :  { %v871_v12 = vmax.f32 %v865_v10, 0.0 }
 0x28e   :  { %v1353_v13 = vpop.f32.mrf.mxu0 }
 0x28f   :  { %v873_v14 = vpack.c.bf16 %v871_v12, %v871_v12 }
 0x290   :  { %v868_v16 = vpop.f32.mrf.mxu0 }
 0x291   :  { %1358 = vmatmul.mubr.msk.bf16.vlgmr.msra.gmra.mxu1 %vm874_vm8, %v873_v14 }
 0x292   :  { %v1354_v17 = vpop.f32.mrf.mxu0  ;;  %1370 = vmatpush3.bf16.msra.mxu1 %v996_v15  ;;  %1371 = vmatprep.mubr.msk.bf16.mxu1 %vm1558_vm1, %v1557_v50  ;;  %v1468_v50 = vpop.eup %1467 }
 0x293   :  { %1381 = vpush %v1468_v50 }
 0x294   :  { %v983_v18 = vpop.f32.mrf.mxu0 }
 0x295   :  { %v989_v19 = vmax.f32 %v983_v18, 0.0 }
 0x296   :  { %v1367_v20 = vpop.f32.mrf.mxu0 }
 0x297   :  { %v991_v21 = vpack.c.bf16 %v989_v19, %v989_v19 }
 0x298   :  { %v986_v22 = vpop.f32.mrf.mxu0 }
 0x299   :  { %1372 = vmatmul.mubr.msk.bf16.vlgmr.msra.gmra.mxu1 %vm874_vm8, %v991_v21 }
 0x29a   :  { %v1368_v23 = vpop.f32.mrf.mxu0 }
 0x351   :  { %v916_v24 = vpop.f32.mrf.mxu1 }
 0x352   :  { %v922_v27 = vmax.f32 %v916_v24, 0.0 }
 0x353   :  { %v1359_v25 = vpop.f32.mrf.mxu1 }
 0x354   :  { %v924_v34 = vmul.f32 %v923_v28, %v922_v27 }
 0x355   :  { %v919_v26 = vpop.f32.mrf.mxu1 }
 0x356   :  { %v928_v42 = vadd.f32 %v927_v39, %v924_v34 }
 0x357   :  { %v1360_v29 = vpop.f32.mrf.mxu1 }
 0x358   :  { %v1045_v46 = vmul.f32 %v928_v42, %v928_v42 }
 0x359   :  { %v1032_v30 = vpop.f32.mrf.mxu1 }
 0x35a   :  { %v1038_v35 = vmax.f32 %v1032_v30, 0.0  ;;  %v1046_v47 = vsel %vm780_vm0, %v1045_v46, 0.0 }
 0x35b   :  { %v1373_v36 = vpop.f32.mrf.mxu1 }
 0x35c   :  { %v1040_v37 = vmul.f32 %v1039_v31, %v1038_v35 }
 0x35d   :  { %v1035_v40 = vpop.f32.mrf.mxu1 }
 0x35e   :  { %v1044_v41 = vadd.f32 %v1043_v38, %v1040_v37 }
 0x35f   :  { %v1374_v43 = vpop.f32.mrf.mxu1 }
 0x360   :  { %v1058_v44 = vmul.f32 %v1044_v41, %v1044_v41 }
 0x362   :  { %v1059_v45 = vsel %vm780_vm0, %v1058_v44, 0.0 }
 0x363   :  { %1060 = vadd.xlane.f32.xlu1 %v1059_v45 }
 0x367   :  { %1047 = vadd.xlane.f32.xlu1 %v1046_v47 }
 0x3ec   :  { %v1061_v51 = vpop.xlane.xlu1 %1060 }
 0x3ed   :  { %1469 = vrsqrt.f32 %v1061_v51  ;;  %vm1064_vm9 = vcmp.eq.f32.partialorder %v1061_v51, inf  ;;  %v1067_v55 = vand.u32 2147483648, %v1061_v51  ;;  %vm1066_vm10 = vcmp.eq.f32.partialorder %v1061_v51, 0.0 }
 0x3f0   :  { %v1048_v52 = vpop.xlane.xlu1 %1047 }
 0x3f1   :  { %1471 = vrsqrt.f32 %v1048_v52  ;;  %vm1051_vm11 = vcmp.eq.f32.partialorder %v1048_v52, inf  ;;  %v1054_v60 = vand.u32 2147483648, %v1048_v52  ;;  %vm1053_vm12 = vcmp.eq.f32.partialorder %v1048_v52, 0.0 }
 0x3fa   :  { %v1470_v53 = vpop.eup %1469 }
 0x3fb   :  { %v1063_v54 = vmul.f32 %v1470_v53, %v1061_v51 }
 0x3fd   :  { %v1065_v56 = vsel %vm1064_vm9, %v1061_v51, %v1063_v54 }
 0x3fe   :  { %v1472_v57 = vpop.eup %1471  ;;  %v1068_v58 = vsel %vm1066_vm10, %v1067_v55, %v1065_v56 }
 0x3ff   :  { %1473 = vrcp.f32 %v1068_v58  ;;  %v1050_v59 = vmul.f32 %v1472_v57, %v1048_v52 }
 0x401   :  { %v1052_v61 = vsel %vm1051_vm11, %v1048_v52, %v1050_v59 }
 0x402   :  { %v1055_v62 = vsel %vm1053_vm12, %v1054_v60, %v1052_v61 }
 0x403   :  { %1475 = vrcp.f32 %v1055_v62 }
 0x40c   :  { %v1474_v63 = vpop.eup %1473 }
 0x40d   :  { %v1070_v0 = vmul.f32 %v1474_v63, %v1044_v41 }
 0x40f   :  { %v1072_v1 = vpack.c.bf16 %v1070_v0, %v1070_v0  ;;  %1129 = vst.msk [vmem:[#allocation8] sm:$0x3] %vm780_vm0, %v1070_v0 }
 0x410   :  { %v1476_v2 = vpop.eup %1475 }
 0x411   :  { %v1077_v3 = vsel %vm827_vm7, %v1072_v1, 0  ;;  %v1057_v4 = vmul.f32 %v1476_v2, %v928_v42 }
 0x412   :  { %1376 = vmatpush3.bf16.xpose.msra.mxu0 %v1077_v3 }
 0x413   :  { %1128 = vst.msk [vmem:[#allocation6] sm:$0x3] %vm780_vm0, %v1057_v4  ;;  %v1071_v5 = vpack.c.bf16 %v1057_v4, %v1057_v4 }
 0x419   :  { %1378 = vmatmul.mubr.msk.bf16.vlgmr.msra.gmra.mxu0 %vm827_vm7, %v1071_v5 }
 0x41a   :  { %1500 = shalt.err (!%p1497_p9)
}
 0x41b   :  { %1149 = dma.vmem_to_hbm [thread:$0]  %s1147_s11, 32, %s1896_s9, [#allocation7]  }
 0x41c   :  { %s1560_s15 = smov [#allocation8]  }
 0x41d   :  { %s1156_s16 = sshll.u32 %s1560_s15, 4  ;;  %s1157_s16 = int_to_ptr.vmem [resolvable:$true] %s1156_s16 }
 0x41e   :  { %s1509_s17 = scalar_lea.vmem %s1157_s16, 32  ;;  %p1514_p11 = scmp.lt.s32.totalorder %s1157_s16, %s1157_s16 }
 0x41f   :  { %p1510_p10 = scmp.ne.s32.totalorder %s1157_s16, %s1509_s17  ;;  %p1515_p12 = scmp.lt.s32.totalorder %s1509_s17, %s1509_s17 }
 0x421   :  { %p1516_p13 = por %p1515_p12, %p1514_p11 }
 0x423   :  { %p1517_p0 = pnand %p1516_p13, %p1510_p10 }
 0x425   :  { %1520 = shalt.err (!%p1517_p0)
}
 0x426   :  { %1159 = dma.vmem_to_hbm [thread:$0]  %s1157_s16, 32, %s1897_s10, [#allocation7]   ;;  %vm1126_vm13 = vcmask 9216  }
 0x427   :  { %s1382_s19 = spop %1381  ;;  %s1561_s3 = smov [#allocation5]  }
 0x428   :  { %v1124_v6 = vstv %s1382_s19  ;;  %s1136_s20 = sshll.u32 %s1561_s3, 4  ;;  %s1137_s20 = int_to_ptr.vmem [resolvable:$true] %s1136_s20 }
 0x429   :  { %s1529_s9 = scalar_lea.vmem %s1137_s20, 32  ;;  %p1534_p2 = scmp.lt.s32.totalorder %s1137_s20, %s1137_s20 }
 0x42a   :  { %p1530_p1 = scmp.ne.s32.totalorder %s1137_s20, %s1529_s9  ;;  %p1535_p3 = scmp.lt.s32.totalorder %s1529_s9, %s1529_s9 }
 0x42c   :  { %p1536_p4 = por %p1535_p3, %p1534_p2 }
 0x42e   :  { %p1537_p5 = pnand %p1536_p4, %p1530_p1 }
 0x4d9   :  { %v1113_v7 = vpop.f32.mrf.mxu0 }
 0x4da   :  { %v1125_v8 = vmul.f32 %v1124_v6, %v1113_v7 }
 0x4db   :  { %v1379_v9 = vpop.f32.mrf.mxu0 }
 0x4dc   :  { %1127 = vst.msk [vmem:[#allocation5] sm:$0x3] %vm1126_vm13, %v1125_v8 }
 0x4dd   :  { %v1116_v10 = vpop.f32.mrf.mxu0 }
 0x4de   :  { %1540 = shalt.err (!%p1537_p5)
}
 0x4df   :  { %1139 = dma.vmem_to_hbm [thread:$0]  %s1137_s20, 32, %s1895_s8, [#allocation3]   ;;  %v1380_v11 = vpop.f32.mrf.mxu0 }
 0x4e0   :  { %1551 = dma.done.wait [#allocation3], 32  }
 0x4e1   :  { %1552 = vsyncadd [#allocation3], 4294967264 }
 0x4e2   :  { %1553 = dma.done.wait [#allocation7], 64  }
 0x4e3   :  { %1554 = vsyncadd [#allocation7], 4294967232 }
 0x4e4   :  { %1169 = vsyncpa [#allocation3], 1 }
 0x4e5   :  { %1170 = vsyncpa [#allocation7], 1 }
 0x4e6   :  { %1171 = vsyncpa [#allocation4], 1 }

</bundles_post_ra>
